<compile_context>
chip_gen: v7x
topology: tpu7x:2x2x1
jax: 0.10.0
libtpu: 0.0.40
codegen_flags: <defaults>
</compile_context>

<pallas_src>
import jax
import jax.numpy as jnp
from jax.experimental import pallas as pl
from jax.experimental.pallas import tpu as pltpu

# ---- model hyperparameters (small, consistent with the module) -------------
BATCH = 2          # args.batch_size
SEQ_LEN = 8        # args.seq_length
NHID = 32          # args.nhid
INPUT_DIM = 2      # self.embed_dim (RNN input_size=2)
NLAYERS = 1        # args.nlayers
DEC_OUT = 10
FINAL_OUT = 1


def _align8(n):
    return ((n + 7) // 8) * 8


# sublane-aligned row offsets inside the packed RNN-weight array (width H)
WIH_OFF = 0                          # rows [0, INPUT_DIM)      : weight_ih_l0.T
WHH_OFF = _align8(INPUT_DIM)         # rows [8, 8 + NHID)       : weight_hh_l0.T
BIAS_OFF = WHH_OFF + NHID            # row  [40]                : b_ih + b_hh
PACK_ROWS = _align8(BIAS_OFF + 1)    # 48 total rows

# row offsets inside the packed decoder array (width DEC_OUT = 10)
TH = SEQ_LEN * NHID                  # 256
BDEC_ROW = TH                        # row 256 : decoder.bias
WDEC2_ROW = TH + 1                   # row 257 : decoder2.weight (10,)
BDEC2_ROW = TH + 2                   # row 258, col 0 : decoder2.bias
DEC_ROWS = _align8(TH + 3)           # 264 total rows


def rnn_forward_kernel(x_ref,      # (T*B, I)       time-major flattened input
                       rnnw_ref,   # (PACK_ROWS, H) packed wih^T / whh^T / bias
                       dec_ref,    # (DEC_ROWS, 10) packed wdec^T / b_dec / w2 / b2
                       out_ref,    # (B, 1)
                       xp_ref,     # scratch (T*B, H) : hoisted input projection
                       hall_ref):  # scratch (B, T*H) : concatenated hidden states
    TB = x_ref.shape[0]
    H = rnnw_ref.shape[1]
    B = hall_ref.shape[0]
    T = TB // B

    wih0 = rnnw_ref[WIH_OFF + 0:WIH_OFF + 1, :]   # (1, H)  row 0 of w_ih^T
    wih1 = rnnw_ref[WIH_OFF + 1:WIH_OFF + 2, :]   # (1, H)  row 1 of w_ih^T
    whh_t = rnnw_ref[WHH_OFF:WHH_OFF + H, :]      # (H, H)  sole in-loop MXU RHS
    bias = rnnw_ref[BIAS_OFF:BIAS_OFF + 1, :]     # (1, H)  b_ih + b_hh

    # (1) Hoisted input projection + biases on the VPU (K=2 contraction is not
    #     worth an MXU pass and would gate step 0 of the recurrence).
    x = x_ref[...]                                            # (T*B, 2)
    xp_ref[...] = x[:, 0:1] * wih0 + x[:, 1:2] * wih1 + bias  # (T*B, H)

    # (2) Recurrence, fully unrolled: only h @ Whh^T + add + tanh sits on the
    #     serial critical path.  The per-step store of h_t into the (B, T*H)
    #     slab is an off-critical-path vst at a static lane offset.
    h = jnp.zeros((B, H), jnp.float32)            # init_hidden -> zeros
    for t in range(T):
        pre = xp_ref[t * B:(t + 1) * B, :] + jnp.dot(
            h, whh_t, preferred_element_type=jnp.float32)
        h = jnp.tanh(pre)                         # nonlinearity='tanh'
        hall_ref[:, t * H:(t + 1) * H] = h

    # (3) Decoder: one (B, T*H) @ (T*H, 10) MXU matmul (was 8 in-loop dots).
    wdec = dec_ref[0:T * H, :]                    # (T*H, 10) = decoder.weight^T
    bdec = dec_ref[BDEC_ROW:BDEC_ROW + 1, :]      # (1, 10)   decoder.bias
    w2 = dec_ref[WDEC2_ROW:WDEC2_ROW + 1, :]      # (1, 10)   decoder2.weight
    b2 = dec_ref[BDEC2_ROW:BDEC2_ROW + 1, 0:1]    # (1, 1)    decoder2.bias

    acc = jnp.dot(hall_ref[...], wdec, preferred_element_type=jnp.float32)
    decoded = jnp.maximum(acc + bdec, 0.0)        # F.relu
    # (B,10)@(10,1) as VPU multiply + lane reduce (avoids width-1 MXU pass).
    out_ref[...] = jnp.sum(decoded * w2, axis=-1, keepdims=True) + b2


def prepare_params(params):
    """One-time (out of the hot path) packing of the torch-layout parameters."""
    H, T, I = NHID, SEQ_LEN, INPUT_DIM
    assert params["w_ih"].shape == (H, I)
    assert params["w_hh"].shape == (H, H)
    assert params["w_dec"].shape == (DEC_OUT, T * H), (
        "decoder weight must act on the flattened (B, T*H) RNN output")

    rnnw = jnp.zeros((PACK_ROWS, H), jnp.float32)
    rnnw = rnnw.at[WIH_OFF:WIH_OFF + I].set(params["w_ih"].T)
    rnnw = rnnw.at[WHH_OFF:WHH_OFF + H].set(params["w_hh"].T)
    rnnw = rnnw.at[BIAS_OFF].set(params["b_ih"] + params["b_hh"])

    # decoder.weight (10, T*H) acting on the row-major flatten of (B, T, H):
    #   flat index k = t*H + h  ->  wdec_flat[k, o] = W[o, k]  (i.e. W^T),
    # matching hall[b, t*H + h] = h_t[b, h] built in the kernel.
    dec = jnp.zeros((DEC_ROWS, DEC_OUT), jnp.float32)
    dec = dec.at[0:T * H].set(params["w_dec"].T)
    dec = dec.at[BDEC_ROW].set(params["b_dec"])
    dec = dec.at[WDEC2_ROW].set(params["w_dec2"].reshape(DEC_OUT))
    dec = dec.at[BDEC2_ROW, 0].set(params["b_dec2"][0])

    return {"rnnw": rnnw, "dec": dec}


@jax.jit
def rnn_forward(x_btd, rnnw, dec):
    """x_btd: (B, T, I) float32, batch_first like the torch module."""
    B, T, I = x_btd.shape
    H = rnnw.shape[1]
    # time-major flatten so each timestep is a contiguous (B, I) row block
    # TODO(synk): feed x pre-transposed from the caller to drop this tiny op
    # from the per-call path entirely.
    x_tb = jnp.transpose(x_btd, (1, 0, 2)).reshape(T * B, I)

    vmem = pl.BlockSpec(memory_space=pltpu.MemorySpace.VMEM)
    return pl.pallas_call(
        rnn_forward_kernel,
        out_shape=jax.ShapeDtypeStruct((B, FINAL_OUT), jnp.float32),
        in_specs=[vmem, vmem, vmem],
        out_specs=vmem,
        scratch_shapes=[pltpu.VMEM((T * B, H), jnp.float32),   # xproj
                        pltpu.VMEM((B, T * H), jnp.float32)],  # hidden slab
    )(x_tb, rnnw, dec)


def reference_forward(x_btd, params):
    """Pure-JAX reference matching torch semantics (for validation)."""
    B, T, I = x_btd.shape
    H = params["w_hh"].shape[0]
    h = jnp.zeros((B, H), jnp.float32)
    outs = []
    for t in range(T):
        h = jnp.tanh(x_btd[:, t, :] @ params["w_ih"].T + params["b_ih"]
                     + h @ params["w_hh"].T + params["b_hh"])
        outs.append(h)
    out = jnp.stack(outs, axis=1)                    # (B, T, H), batch_first
    d = out.reshape(B, -1) @ params["w_dec"].T + params["b_dec"]
    d = jnp.maximum(d, 0.0)
    return d @ params["w_dec2"].T + params["b_dec2"]


def make_params(key):
    ks = jax.random.split(key, 8)
    s = 0.1
    return {
        "w_ih":  s * jax.random.normal(ks[0], (NHID, INPUT_DIM), jnp.float32),
        "w_hh":  s * jax.random.normal(ks[1], (NHID, NHID), jnp.float32),
        "b_ih":  s * jax.random.normal(ks[2], (NHID,), jnp.float32),
        "b_hh":  s * jax.random.normal(ks[3], (NHID,), jnp.float32),
        "w_dec": s * jax.random.normal(ks[4], (DEC_OUT, NHID * SEQ_LEN), jnp.float32),
        "b_dec": s * jax.random.normal(ks[5], (DEC_OUT,), jnp.float32),
        "w_dec2": s * jax.random.normal(ks[6], (FINAL_OUT, DEC_OUT), jnp.float32),
        "b_dec2": s * jax.random.normal(ks[7], (FINAL_OUT,), jnp.float32),
    }


if __name__ == "__main__":
    key = jax.random.PRNGKey(0)
    kx, kp = jax.random.split(key)
    x = jax.random.normal(kx, (BATCH, SEQ_LEN, INPUT_DIM), jnp.float32)
    params = make_params(kp)

    prep = prepare_params(params)   # one-time packing, outside per-call path

    y = rnn_forward(x, prep["rnnw"], prep["dec"])
    y = jax.block_until_ready(y)

    y_ref = reference_forward(x, params)
    assert y.shape == (BATCH, FINAL_OUT)
    assert jnp.allclose(y, y_ref, atol=1e-5, rtol=1e-5), (y, y_ref)
    print("KERNEL_OK")
</pallas_src>

<mosaic_0001>
module attributes {stable_mosaic.version = 11 : i64} {
  func.func @rnn_forward_kernel(%arg0: memref<16x2xf32, #tpu.memory_space<vmem>>, %arg1: memref<48x32xf32, #tpu.memory_space<vmem>>, %arg2: memref<264x10xf32, #tpu.memory_space<vmem>>, %arg3: memref<2x1xf32, #tpu.memory_space<vmem>>, %arg4: memref<16x32xf32, #tpu.memory_space<vmem>>, %arg5: memref<2x256xf32, #tpu.memory_space<vmem>>) attributes {dimension_semantics = [], scalar_prefetch = 0 : i64, scratch_operands = 2 : i64, tpu.core_type = #tpu.core_type<tc>} {
    %c0 = arith.constant 0 : index
    %c0_0 = arith.constant 0 : index
    %0 = vector.load %arg1[%c0, %c0_0] : memref<48x32xf32, #tpu.memory_space<vmem>>, vector<1x32xf32>
    %c1 = arith.constant 1 : index
    %c0_1 = arith.constant 0 : index
    %1 = vector.load %arg1[%c1, %c0_1] : memref<48x32xf32, #tpu.memory_space<vmem>>, vector<1x32xf32>
    %c8 = arith.constant 8 : index
    %c0_2 = arith.constant 0 : index
    %2 = vector.load %arg1[%c8, %c0_2] : memref<48x32xf32, #tpu.memory_space<vmem>>, vector<32x32xf32>
    %c40 = arith.constant 40 : index
    %c0_3 = arith.constant 0 : index
    %3 = vector.load %arg1[%c40, %c0_3] : memref<48x32xf32, #tpu.memory_space<vmem>>, vector<1x32xf32>
    %c0_4 = arith.constant 0 : index
    %c0_5 = arith.constant 0 : index
    %4 = vector.load %arg0[%c0_4, %c0_5] : memref<16x2xf32, #tpu.memory_space<vmem>>, vector<16x2xf32>
    %5 = vector.extract_strided_slice %4 {offsets = [0, 0], sizes = [16, 1], strides = [1, 1]} : vector<16x2xf32> to vector<16x1xf32>
    %6 = vector.broadcast %5 : vector<16x1xf32> to vector<16x32xf32>
    %7 = vector.broadcast %0 : vector<1x32xf32> to vector<16x32xf32>
    %8 = arith.mulf %6, %7 : vector<16x32xf32>
    %9 = vector.extract_strided_slice %4 {offsets = [0, 1], sizes = [16, 1], strides = [1, 1]} : vector<16x2xf32> to vector<16x1xf32>
    %10 = vector.broadcast %9 : vector<16x1xf32> to vector<16x32xf32>
    %11 = vector.broadcast %1 : vector<1x32xf32> to vector<16x32xf32>
    %12 = arith.mulf %10, %11 : vector<16x32xf32>
    %13 = arith.addf %8, %12 : vector<16x32xf32>
    %14 = vector.broadcast %3 : vector<1x32xf32> to vector<16x32xf32>
    %15 = arith.addf %13, %14 : vector<16x32xf32>
    %c0_6 = arith.constant 0 : index
    %c0_7 = arith.constant 0 : index
    %16 = vector.load %arg4[%c0_6, %c0_7] : memref<16x32xf32, #tpu.memory_space<vmem>>, vector<16x32xf32>
    tpu.vector_store %arg4[%c0_6, %c0_7], %15 {strides = array<i32>} : memref<16x32xf32, #tpu.memory_space<vmem>>, vector<16x32xf32>,
    %cst = arith.constant 0.000000e+00 : f32
    %17 = vector.broadcast %cst : f32 to vector<2x32xf32>
    %c0_8 = arith.constant 0 : index
    %c0_9 = arith.constant 0 : index
    %18 = vector.load %arg4[%c0_8, %c0_9] : memref<16x32xf32, #tpu.memory_space<vmem>>, vector<2x32xf32>
    %cst_10 = arith.constant dense<0.000000e+00> : vector<2x32xf32>
    %19 = tpu.matmul %17, %2, %cst_10 {dimension_numbers = #tpu.dot_dimension_numbers<[1], [0], [0], [1], [0, 0, 1, 1], [], []>} : vector<2x32xf32>, vector<32x32xf32>, vector<2x32xf32> -> vector<2x32xf32>
    %20 = arith.addf %18, %19 : vector<2x32xf32>
    %21 = math.tanh %20 : vector<2x32xf32>
    %c0_11 = arith.constant 0 : index
    %c0_12 = arith.constant 0 : index
    %22 = vector.load %arg5[%c0_11, %c0_12] : memref<2x256xf32, #tpu.memory_space<vmem>>, vector<2x32xf32>
    tpu.vector_store %arg5[%c0_11, %c0_12], %21 {strides = array<i32>} : memref<2x256xf32, #tpu.memory_space<vmem>>, vector<2x32xf32>,
    %c2 = arith.constant 2 : index
    %c0_13 = arith.constant 0 : index
    %23 = vector.load %arg4[%c2, %c0_13] : memref<16x32xf32, #tpu.memory_space<vmem>>, vector<2x32xf32>
    %cst_14 = arith.constant dense<0.000000e+00> : vector<2x32xf32>
    %24 = tpu.matmul %21, %2, %cst_14 {dimension_numbers = #tpu.dot_dimension_numbers<[1], [0], [0], [1], [0, 0, 1, 1], [], []>} : vector<2x32xf32>, vector<32x32xf32>, vector<2x32xf32> -> vector<2x32xf32>
    %25 = arith.addf %23, %24 : vector<2x32xf32>
    %26 = math.tanh %25 : vector<2x32xf32>
    %c0_15 = arith.constant 0 : index
    %c32 = arith.constant 32 : index
    %27 = vector.load %arg5[%c0_15, %c32] : memref<2x256xf32, #tpu.memory_space<vmem>>, vector<2x32xf32>
    tpu.vector_store %arg5[%c0_15, %c32], %26 {strides = array<i32>} : memref<2x256xf32, #tpu.memory_space<vmem>>, vector<2x32xf32>,
    %c4 = arith.constant 4 : index
    %c0_16 = arith.constant 0 : index
    %28 = vector.load %arg4[%c4, %c0_16] : memref<16x32xf32, #tpu.memory_space<vmem>>, vector<2x32xf32>
    %cst_17 = arith.constant dense<0.000000e+00> : vector<2x32xf32>
    %29 = tpu.matmul %26, %2, %cst_17 {dimension_numbers = #tpu.dot_dimension_numbers<[1], [0], [0], [1], [0, 0, 1, 1], [], []>} : vector<2x32xf32>, vector<32x32xf32>, vector<2x32xf32> -> vector<2x32xf32>
    %30 = arith.addf %28, %29 : vector<2x32xf32>
    %31 = math.tanh %30 : vector<2x32xf32>
    %c0_18 = arith.constant 0 : index
    %c64 = arith.constant 64 : index
    %32 = vector.load %arg5[%c0_18, %c64] : memref<2x256xf32, #tpu.memory_space<vmem>>, vector<2x32xf32>
    tpu.vector_store %arg5[%c0_18, %c64], %31 {strides = array<i32>} : memref<2x256xf32, #tpu.memory_space<vmem>>, vector<2x32xf32>,
    %c6 = arith.constant 6 : index
    %c0_19 = arith.constant 0 : index
    %33 = vector.load %arg4[%c6, %c0_19] : memref<16x32xf32, #tpu.memory_space<vmem>>, vector<2x32xf32>
    %cst_20 = arith.constant dense<0.000000e+00> : vector<2x32xf32>
    %34 = tpu.matmul %31, %2, %cst_20 {dimension_numbers = #tpu.dot_dimension_numbers<[1], [0], [0], [1], [0, 0, 1, 1], [], []>} : vector<2x32xf32>, vector<32x32xf32>, vector<2x32xf32> -> vector<2x32xf32>
    %35 = arith.addf %33, %34 : vector<2x32xf32>
    %36 = math.tanh %35 : vector<2x32xf32>
    %c0_21 = arith.constant 0 : index
    %c96 = arith.constant 96 : index
    %37 = vector.load %arg5[%c0_21, %c96] : memref<2x256xf32, #tpu.memory_space<vmem>>, vector<2x32xf32>
    tpu.vector_store %arg5[%c0_21, %c96], %36 {strides = array<i32>} : memref<2x256xf32, #tpu.memory_space<vmem>>, vector<2x32xf32>,
    %c8_22 = arith.constant 8 : index
    %c0_23 = arith.constant 0 : index
    %38 = vector.load %arg4[%c8_22, %c0_23] : memref<16x32xf32, #tpu.memory_space<vmem>>, vector<2x32xf32>
    %cst_24 = arith.constant dense<0.000000e+00> : vector<2x32xf32>
    %39 = tpu.matmul %36, %2, %cst_24 {dimension_numbers = #tpu.dot_dimension_numbers<[1], [0], [0], [1], [0, 0, 1, 1], [], []>} : vector<2x32xf32>, vector<32x32xf32>, vector<2x32xf32> -> vector<2x32xf32>
    %40 = arith.addf %38, %39 : vector<2x32xf32>
    %41 = math.tanh %40 : vector<2x32xf32>
    %c0_25 = arith.constant 0 : index
    %c128 = arith.constant 128 : index
    %42 = vector.load %arg5[%c0_25, %c128] : memref<2x256xf32, #tpu.memory_space<vmem>>, vector<2x32xf32>
    tpu.vector_store %arg5[%c0_25, %c128], %41 {strides = array<i32>} : memref<2x256xf32, #tpu.memory_space<vmem>>, vector<2x32xf32>,
    %c10 = arith.constant 10 : index
    %c0_26 = arith.constant 0 : index
    %43 = vector.load %arg4[%c10, %c0_26] : memref<16x32xf32, #tpu.memory_space<vmem>>, vector<2x32xf32>
    %cst_27 = arith.constant dense<0.000000e+00> : vector<2x32xf32>
    %44 = tpu.matmul %41, %2, %cst_27 {dimension_numbers = #tpu.dot_dimension_numbers<[1], [0], [0], [1], [0, 0, 1, 1], [], []>} : vector<2x32xf32>, vector<32x32xf32>, vector<2x32xf32> -> vector<2x32xf32>
    %45 = arith.addf %43, %44 : vector<2x32xf32>
    %46 = math.tanh %45 : vector<2x32xf32>
    %c0_28 = arith.constant 0 : index
    %c160 = arith.constant 160 : index
    %47 = vector.load %arg5[%c0_28, %c160] : memref<2x256xf32, #tpu.memory_space<vmem>>, vector<2x32xf32>
    tpu.vector_store %arg5[%c0_28, %c160], %46 {strides = array<i32>} : memref<2x256xf32, #tpu.memory_space<vmem>>, vector<2x32xf32>,
    %c12 = arith.constant 12 : index
    %c0_29 = arith.constant 0 : index
    %48 = vector.load %arg4[%c12, %c0_29] : memref<16x32xf32, #tpu.memory_space<vmem>>, vector<2x32xf32>
    %cst_30 = arith.constant dense<0.000000e+00> : vector<2x32xf32>
    %49 = tpu.matmul %46, %2, %cst_30 {dimension_numbers = #tpu.dot_dimension_numbers<[1], [0], [0], [1], [0, 0, 1, 1], [], []>} : vector<2x32xf32>, vector<32x32xf32>, vector<2x32xf32> -> vector<2x32xf32>
    %50 = arith.addf %48, %49 : vector<2x32xf32>
    %51 = math.tanh %50 : vector<2x32xf32>
    %c0_31 = arith.constant 0 : index
    %c192 = arith.constant 192 : index
    %52 = vector.load %arg5[%c0_31, %c192] : memref<2x256xf32, #tpu.memory_space<vmem>>, vector<2x32xf32>
    tpu.vector_store %arg5[%c0_31, %c192], %51 {strides = array<i32>} : memref<2x256xf32, #tpu.memory_space<vmem>>, vector<2x32xf32>,
    %c14 = arith.constant 14 : index
    %c0_32 = arith.constant 0 : index
    %53 = vector.load %arg4[%c14, %c0_32] : memref<16x32xf32, #tpu.memory_space<vmem>>, vector<2x32xf32>
    %cst_33 = arith.constant dense<0.000000e+00> : vector<2x32xf32>
    %54 = tpu.matmul %51, %2, %cst_33 {dimension_numbers = #tpu.dot_dimension_numbers<[1], [0], [0], [1], [0, 0, 1, 1], [], []>} : vector<2x32xf32>, vector<32x32xf32>, vector<2x32xf32> -> vector<2x32xf32>
    %55 = arith.addf %53, %54 : vector<2x32xf32>
    %56 = math.tanh %55 : vector<2x32xf32>
    %c0_34 = arith.constant 0 : index
    %c224 = arith.constant 224 : index
    %57 = vector.load %arg5[%c0_34, %c224] : memref<2x256xf32, #tpu.memory_space<vmem>>, vector<2x32xf32>
    tpu.vector_store %arg5[%c0_34, %c224], %56 {strides = array<i32>} : memref<2x256xf32, #tpu.memory_space<vmem>>, vector<2x32xf32>,
    %c0_35 = arith.constant 0 : index
    %c0_36 = arith.constant 0 : index
    %58 = vector.load %arg2[%c0_35, %c0_36] : memref<264x10xf32, #tpu.memory_space<vmem>>, vector<256x10xf32>
    %c256 = arith.constant 256 : index
    %c0_37 = arith.constant 0 : index
    %59 = vector.load %arg2[%c256, %c0_37] : memref<264x10xf32, #tpu.memory_space<vmem>>, vector<1x10xf32>
    %c257 = arith.constant 257 : index
    %c0_38 = arith.constant 0 : index
    %60 = vector.load %arg2[%c257, %c0_38] : memref<264x10xf32, #tpu.memory_space<vmem>>, vector<1x10xf32>
    %c258 = arith.constant 258 : index
    %c0_39 = arith.constant 0 : index
    %61 = vector.load %arg2[%c258, %c0_39] : memref<264x10xf32, #tpu.memory_space<vmem>>, vector<1x1xf32>
    %c0_40 = arith.constant 0 : index
    %c0_41 = arith.constant 0 : index
    %62 = vector.load %arg5[%c0_40, %c0_41] : memref<2x256xf32, #tpu.memory_space<vmem>>, vector<2x256xf32>
    %cst_42 = arith.constant dense<0.000000e+00> : vector<2x10xf32>
    %63 = tpu.matmul %62, %58, %cst_42 {dimension_numbers = #tpu.dot_dimension_numbers<[1], [0], [0], [1], [0, 0, 1, 1], [], []>} : vector<2x256xf32>, vector<256x10xf32>, vector<2x10xf32> -> vector<2x10xf32>
    %64 = vector.broadcast %59 : vector<1x10xf32> to vector<2x10xf32>
    %65 = arith.addf %63, %64 : vector<2x10xf32>
    %cst_43 = arith.constant 0.000000e+00 : f32
    %66 = vector.broadcast %cst_43 : f32 to vector<2x10xf32>
    %67 = arith.maximumf %65, %66 : vector<2x10xf32>
    %68 = vector.broadcast %60 : vector<1x10xf32> to vector<2x10xf32>
    %69 = arith.mulf %67, %68 : vector<2x10xf32>
    %cst_44 = arith.constant dense<0.000000e+00> : vector<2xf32>
    %70 = vector.multi_reduction <add>, %69, %cst_44 [1] : vector<2x10xf32> to vector<2xf32>
    %71 = vector.shape_cast %70 : vector<2xf32> to vector<2x1xf32>
    %72 = vector.broadcast %61 : vector<1x1xf32> to vector<2x1xf32>
    %73 = arith.addf %71, %72 : vector<2x1xf32>
    %c0_45 = arith.constant 0 : index
    %c0_46 = arith.constant 0 : index
    %74 = vector.load %arg3[%c0_45, %c0_46] : memref<2x1xf32, #tpu.memory_space<vmem>>, vector<2x1xf32>
    tpu.vector_store %arg3[%c0_45, %c0_46], %73 {strides = array<i32>} : memref<2x1xf32, #tpu.memory_space<vmem>>, vector<2x1xf32>,
    return
  }
}

</mosaic_0001>

<bundles_post_ra>
// kernel: rnn_forward.1
= control target key start
LH: loop header
LB: loop body
LE: loop exit
PB: predicated region body
PF: predicated region fallthrough
CT: control target
= control target key end

     0   :  { %v1173_v0 = vmov 0.0|0.0   ;;  %vm1174_vm0 = vmmov 0   ;;  %v1175_v4 = vmov 0.0   ;;  %v1176_v7 = vmov 0   ;;  %s1181_s30 = smov 96   ;;  %s1421_s1 = inlined_call_operand.vmem [shape: f32[48,32], index: 1, kind: input, shape index: {}]   ;;  %s1422_s0 = inlined_call_operand.vmem [shape: f32[16,2], index: 0, kind: input, shape index: {}]   ;;  %s1423_s2 = inlined_call_operand.vmem [shape: f32[264,10], index: 2, kind: input, shape index: {}]   ;;  %s1424_s3 = inlined_call_operand.vmem [shape: f32[2,1], index: 3, kind: output, shape index: {}]  }
   0x1   :  { %1064 = vmatprep.subr.bf16.mxu1 %v1173_v0  ;;  %v16_v1 = vld [vmem:[%s1421_s1 + $0x8] sm:$0xff]  ;;  %v17_v2 = vld [vmem:[%s1421_s1 + $0x10] sm:$0xff]  ;;  %v18_v3 = vld [vmem:[%s1421_s1 + $0x18] sm:$0xff]  ;;  %984 = vmatprep.mubr.msk.f32.mxu1 %vm1174_vm0, %v1175_v4  ;;  %v1177_v10 = vmov 1   ;;  %vm61_vm1 = vcmask 261120   ;;  %vm140_vm2 = vcmask 254976   ;;  %v222_v38 = vlaneseq }
   0x2   :  { %v1214_v5 = vpack.c.bf16 %v17_v2, %v16_v1  ;;  %v19_v6 = vld [vmem:[%s1421_s1 + $0x20] sm:$0xff]  ;;  %1153 = vset.pattern.permute.xlu0 %v1176_v7  ;;  %1155 = vset.pattern.permute.xlu1 %v1176_v7  ;;  %v22_v11 = vld [vmem:[%s1422_s0 + $0x8] sm:$0xff]  ;;  %v1178_v36 = vmov 1983009808   ;;  %vm229_vm3 = vcmask 517376   ;;  %vm317_vm4 = vcmask 779776  }
   0x3   :  { %v21_v8 = vld [vmem:[%s1422_s0] sm:$0xff]  ;;  %1088 = vmatprep.subr.bf16.mxu0 %v1173_v0  ;;  %v1224_v9 = vpack.c.bf16 %v19_v6, %v18_v3  ;;  %1028 = vmatprep.mubr.msk.f32.mxu0 %vm1174_vm0, %v1175_v4  ;;  %v889_v18 = vld [vmem:[%s1421_s1 + $0x28] ss:$0 sm:$0xff]  ;;  %v220_v37 = vunpack.c.l.s4 %v1178_v36  ;;  %v223_v40 = vshrl.u32 %v222_v38, 7  ;;  %s1179_s0 = smov 32   ;;  %vm405_vm5 = vcmask 1042176  }
   0x4   :  { %25 = vperm.xlu0 %1153, %v21_v8   ;;  %1066 = vmatpush3.bf16.msra.mxu1 %v1214_v5  ;;  %v887_v13 = vld [vmem:[%s1421_s1] ss:$0 sm:$0xff]  ;;  %v888_v14 = vld [vmem:[%s1421_s1 + $0x1] ss:$0 sm:$0xff]  ;;  %s1180_s1 = smov 64   ;;  %vm872_vm6 = vcmask 74752  }
   0x5   :  { %1090 = vmatpush3.bf16.msra.mxu0 %v1214_v5  ;;  %1067 = vmatprep.subr.bf16.mxu1 %v1173_v0  ;;  %v221_v39 = vunpack.c.0.s8 %v220_v37  ;;  %v769_v36 = vld [vmem:[%s1423_s2 + $0xc0] sm:$0xff]  ;;  %v770_v37 = vld [vmem:[%s1423_s2 + $0xc8] sm:$0xff]  ;;  %vm881_vm7 = vcmask 1024  }
   0x6   :  { %1091 = vmatprep.subr.bf16.mxu0 %v1173_v0  ;;  %30 = vperm.xlu1 %1155, %v22_v11  }
   0x7   :  { %v1264_v41 = vsub.s32 %v221_v39, %v223_v40  ;;  %v1128_v39 = vpack.c.bf16 %v770_v37, %v769_v36  ;;  %v753_v40 = vld [vmem:[%s1423_s2 + $0x40] sm:$0xff] }
   0x8   :  { %1154 = vset.pattern.permute.xlu0 %v1177_v10  ;;  %1069 = vmatpush3.bf16.msra.mxu1 %v1224_v9 }
   0x9   :  { %40 = vperm.xlu0 %1154, %v21_v8   ;;  %1070 = vmatprep.subr.bf16.mxu1 %v1173_v0 }
   0xa   :  { %1093 = vmatpush3.bf16.msra.mxu0 %v1224_v9  ;;  %1156 = vset.pattern.permute.xlu1 %v1177_v10 }
   0xb   :  { %1100 = vmatprep.subr.bf16.mxu0 %v1173_v0  ;;  %985 = vmatmul.mubr.f32.vlgmr.msra.gmra.mrb[0].mxu1 %v1175_v4 }
   0xc   :  { %1072 = vmatpush3.bf16.msra.mxu1 %v1214_v5  ;;  %995 = vmatprep.mubr.msk.f32.mxu1 %vm1174_vm0, %v1175_v4 }
   0xd   :  { %1073 = vmatprep.subr.bf16.mxu1 %v1173_v0  ;;  %44 = vperm.xlu1 %1156, %v22_v11  }
  0x10   :  { %1075 = vmatpush3.bf16.msra.mxu1 %v1224_v9 }
  0x11   :  { %1076 = vmatprep.subr.bf16.mxu1 %v1173_v0 }
  0x83   :  { %v26_v12 = vpop.permute.xlu0 %25 }
  0x84   :  { %v37_v15 = vmul.f32 %v887_v13, %v26_v12 }
  0x85   :  { %v31_v26 = vpop.permute.xlu1 %30 }
  0x86   :  { %v38_v27 = vmul.f32 %v887_v13, %v31_v26  ;;  %v761_v13 = vld [vmem:[%s1423_s2 + $0x80] sm:$0xff] }
  0x88   :  { %v41_v16 = vpop.permute.xlu0 %40 }
  0x89   :  { %v51_v17 = vmul.f32 %v888_v14, %v41_v16 }
  0x8b   :  { %v53_v19 = vadd.f32 %v51_v17, %v37_v15  ;;  %v745_v15 = vld [vmem:[%s1423_s2] sm:$0xff]  ;;  %v746_v17 = vld [vmem:[%s1423_s2 + $0x8] sm:$0xff] }
  0x8c   :  { %v45_v28 = vpop.permute.xlu1 %44 }
  0x8d   :  { %v59_v20 = vadd.f32 %v889_v18, %v53_v19  ;;  %v52_v29 = vmul.f32 %v888_v14, %v45_v28  ;;  %v762_v14 = vld [vmem:[%s1423_s2 + $0x88] sm:$0xff]  ;;  %v764_v19 = vld [vmem:[%s1423_s2 + $0x98] sm:$0xff]  ;;  %v749_v28 = vld [vmem:[%s1423_s2 + $0x20] sm:$0xff] }
  0x8e   :  { %v1112_v16 = vpack.c.bf16 %v762_v14, %v761_v13 }
  0x8f   :  { %62 = vst.msk [vmem:[#allocation2] sm:$0xff] %vm61_vm1, %v59_v20  ;;  %v54_v30 = vadd.f32 %v52_v29, %v38_v27  ;;  %v1114_v20 = vpack.c.bf16 %v746_v17, %v745_v15  ;;  %v750_v29 = vld [vmem:[%s1423_s2 + $0x28] sm:$0xff] }
  0x91   :  { %v60_v31 = vadd.f32 %v889_v18, %v54_v30  ;;  %v763_v18 = vld [vmem:[%s1423_s2 + $0x90] sm:$0xff] }
  0x92   :  { %v767_v30 = vld [vmem:[%s1423_s2 + $0xb0] sm:$0xff] }
  0x93   :  { %63 = vst.msk [vmem:[#allocation2 + $0x8] sm:$0xff] %vm61_vm1, %v60_v31  ;;  %v768_v31 = vld [vmem:[%s1423_s2 + $0xb8] sm:$0xff] }
  0x96   :  { %v64_v21 = vld [vmem:[#allocation2] sm:$0x3]  ;;  %v142_v32 = vld [vmem:[#allocation2 + $0x2] sm:$0x3]  ;;  %v231_v45 = vld [vmem:[#allocation2 + $0x4] sm:$0x3] }
  0x97   :  { %v319_v52 = vld [vmem:[#allocation2 + $0x6] sm:$0x3] }
  0x9a   :  { %v407_v59 = vld [vmem:[#allocation2 + $0x8] sm:$0x3]  ;;  %v483_v1 = vld [vmem:[#allocation2 + $0xa] sm:$0x3] }
  0xde   :  { %v134_v22 = vpop.f32.mrb[0].mxu1 }
  0xdf   :  { %v138_v23 = vadd.f32 %v134_v22, %v64_v21  ;;  %v986_v24 = vpop.f32.mrb[1].mxu1  ;;  %v1116_v21 = vpack.c.bf16 %v764_v19, %v763_v18  ;;  %v747_v22 = vld [vmem:[%s1423_s2 + $0x10] sm:$0xff] }
  0xe0   :  { %v765_v24 = vld [vmem:[%s1423_s2 + $0xa0] sm:$0xff] }
  0xe1   :  { %1157 = vtanh.f32 %v138_v23  ;;  %v748_v23 = vld [vmem:[%s1423_s2 + $0x18] sm:$0xff] }
  0xe2   :  { %v1118_v26 = vpack.c.bf16 %v748_v23, %v747_v22 }
  0xeb   :  { %v1158_v25 = vpop.eup %1157 }
  0xec   :  { %996 = vmatmul.mubr.msk.f32.vlgmr.msra.gmra.mrb[2].mxu1 %vm61_vm1, %v1158_v25  ;;  %141 = vst.msk [vmem:[#allocation3] sm:$0x3] %vm140_vm2, %v1158_v25  ;;  %v766_v25 = vld [vmem:[%s1423_s2 + $0xa8] sm:$0xff] }
  0xed   :  { %1078 = vmatpush3.bf16.msra.mxu1 %v1214_v5  ;;  %1006 = vmatprep.mubr.msk.f32.mxu1 %vm1174_vm0, %v1175_v4  ;;  %v1120_v27 = vpack.c.bf16 %v766_v25, %v765_v24 }
  0xee   :  { %1079 = vmatprep.subr.bf16.mxu1 %v1173_v0 }
  0xf1   :  { %1081 = vmatpush3.bf16.msra.mxu1 %v1224_v9 }
  0xf2   :  { %1082 = vmatprep.subr.bf16.mxu1 %v1173_v0 }
 0x1bf   :  { %v212_v33 = vpop.f32.mrb[2].mxu1 }
 0x1c0   :  { %v216_v34 = vadd.f32 %v212_v33, %v142_v32  ;;  %v997_v35 = vpop.f32.mrb[3].mxu1  ;;  %v1122_v32 = vpack.c.bf16 %v750_v29, %v749_v28  ;;  %v1124_v33 = vpack.c.bf16 %v768_v31, %v767_v30 }
 0x1c1   :  { %v752_v35 = vld [vmem:[%s1423_s2 + $0x38] sm:$0xff] }
 0x1c2   :  { %1159 = vtanh.f32 %v216_v34  ;;  %v751_v34 = vld [vmem:[%s1423_s2 + $0x30] sm:$0xff] }
 0x1c3   :  { %v1126_v38 = vpack.c.bf16 %v752_v35, %v751_v34 }
 0x1cc   :  { %v1160_v42 = vpop.eup %1159 }
 0x1cd   :  { %1007 = vmatmul.mubr.msk.f32.vlgmr.msra.gmra.mrb[4].mxu1 %vm61_vm1, %v1160_v42  ;;  %v225_v43 = vrot.slane %v1160_v42, %v1264_v41  ;;  %v754_v42 = vld [vmem:[%s1423_s2 + $0x48] sm:$0xff] }
 0x1ce   :  { %1084 = vmatpush3.bf16.msra.mxu1 %v1214_v5  ;;  %1017 = vmatprep.mubr.msk.f32.mxu1 %vm1174_vm0, %v1175_v4 }
 0x1cf   :  { %226 = vrot.lane.b32.xlu1 %v225_v43, %s1179_s0  ;;  %1085 = vmatprep.subr.bf16.mxu1 %v1173_v0  ;;  %v771_v43 = vld [vmem:[%s1423_s2 + $0xd0] sm:$0xff] }
 0x1d2   :  { %1087 = vmatpush3.bf16.msra.mxu1 %v1224_v9 }
 0x1d3   :  { %1094 = vmatprep.subr.bf16.mxu1 %v1173_v0 }
 0x241   :  { %v227_v44 = vpop.permute.xlu1 %226 }
 0x242   :  { %230 = vst.msk [vmem:[#allocation3] sm:$0x3] %vm229_vm3, %v227_v44  ;;  %v772_v44 = vld [vmem:[%s1423_s2 + $0xd8] sm:$0xff] }
 0x2a0   :  { %v300_v46 = vpop.f32.mrb[4].mxu1 }
 0x2a1   :  { %v304_v47 = vadd.f32 %v300_v46, %v231_v45  ;;  %v1008_v48 = vpop.f32.mrb[5].mxu1  ;;  %v1130_v46 = vpack.c.bf16 %v754_v42, %v753_v40 }
 0x2a2   :  { %v658_v48 = vld [vmem:[#allocation2 + $0xe] sm:$0x3] }
 0x2a3   :  { %1161 = vtanh.f32 %v304_v47  ;;  %v1132_v47 = vpack.c.bf16 %v772_v44, %v771_v43 }
 0x2ad   :  { %v1162_v49 = vpop.eup %1161 }
 0x2ae   :  { %1018 = vmatmul.mubr.msk.f32.vlgmr.msra.gmra.mrb[6].mxu1 %vm61_vm1, %v1162_v49  ;;  %v313_v50 = vrot.slane %v1162_v49, %v1264_v41 }
 0x2af   :  { %1096 = vmatpush3.bf16.msra.mxu1 %v1214_v5  ;;  %1039 = vmatprep.mubr.msk.f32.mxu1 %vm1174_vm0, %v1175_v4 }
 0x2b0   :  { %314 = vrot.lane.b32.xlu1 %v313_v50, %s1180_s1  ;;  %1097 = vmatprep.subr.bf16.mxu1 %v1173_v0  ;;  %v755_v50 = vld [vmem:[%s1423_s2 + $0x50] sm:$0xff] }
 0x2b3   :  { %1099 = vmatpush3.bf16.msra.mxu1 %v1224_v9 }
 0x2b4   :  { %1106 = vmatprep.subr.bf16.mxu1 %v1173_v0 }
 0x322   :  { %v315_v51 = vpop.permute.xlu1 %314 }
 0x323   :  { %318 = vst.msk [vmem:[#allocation3] sm:$0x3] %vm317_vm4, %v315_v51  ;;  %v756_v51 = vld [vmem:[%s1423_s2 + $0x58] sm:$0xff] }
 0x381   :  { %v388_v53 = vpop.f32.mrb[6].mxu1 }
 0x382   :  { %v392_v54 = vadd.f32 %v388_v53, %v319_v52  ;;  %v1019_v55 = vpop.f32.mrb[7].mxu1 }
 0x383   :  { %v773_v55 = vld [vmem:[%s1423_s2 + $0xe0] sm:$0xff] }
 0x384   :  { %1163 = vtanh.f32 %v392_v54  ;;  %v1134_v54 = vpack.c.bf16 %v756_v51, %v755_v50 }
 0x38e   :  { %v1164_v56 = vpop.eup %1163 }
 0x38f   :  { %1029 = vmatmul.mubr.msk.f32.vlgmr.msra.gmra.mrb[0].mxu0 %vm61_vm1, %v1164_v56  ;;  %v401_v57 = vrot.slane %v1164_v56, %v1264_v41  ;;  %v774_v56 = vld [vmem:[%s1423_s2 + $0xe8] sm:$0xff] }
 0x390   :  { %1102 = vmatpush3.bf16.msra.mxu0 %v1214_v5  ;;  %1050 = vmatprep.mubr.msk.f32.mxu0 %vm1174_vm0, %v1175_v4 }
 0x391   :  { %402 = vrot.lane.b32.xlu1 %v401_v57, %s1181_s30  ;;  %1103 = vmatprep.subr.bf16.mxu0 %v1173_v0  ;;  %v757_v57 = vld [vmem:[%s1423_s2 + $0x60] sm:$0xff] }
 0x394   :  { %1105 = vmatpush3.bf16.msra.mxu0 %v1224_v9 }
 0x395   :  { %1113 = vmatprep.subr.bf16.mxu0 %v1112_v16  ;;  %v900_v16 = vld [vmem:[%s1423_s2 + $0x102] ss:$0 sm:$0xff] }
 0x403   :  { %v403_v58 = vpop.permute.xlu1 %402 }
 0x404   :  { %406 = vst.msk [vmem:[#allocation3] sm:$0x3] %vm405_vm5, %v403_v58  ;;  %v1136_v58 = vpack.c.bf16 %v774_v56, %v773_v55 }
 0x462   :  { %v476_v60 = vpop.f32.mrb[0].mxu0 }
 0x463   :  { %v480_v61 = vadd.f32 %v476_v60, %v407_v59  ;;  %v1030_v62 = vpop.f32.mrb[1].mxu0  ;;  %v758_v59 = vld [vmem:[%s1423_s2 + $0x68] sm:$0xff]  ;;  %v775_v60 = vld [vmem:[%s1423_s2 + $0xf0] sm:$0xff] }
 0x464   :  { %v1138_v62 = vpack.c.bf16 %v758_v59, %v757_v57 }
 0x465   :  { %1165 = vtanh.f32 %v480_v61  ;;  %v776_v61 = vld [vmem:[%s1423_s2 + $0xf8] sm:$0xff] }
 0x46f   :  { %v1166_v63 = vpop.eup %1165 }
 0x470   :  { %482 = vst.msk [vmem:[#allocation3 + $0x2] sm:$0x3] %vm140_vm2, %v1166_v63  ;;  %1040 = vmatmul.mubr.msk.f32.vlgmr.msra.gmra.mrb[8].mxu1 %vm61_vm1, %v1166_v63  ;;  %v1140_v63 = vpack.c.bf16 %v776_v61, %v775_v60 }
 0x471   :  { %1108 = vmatpush3.bf16.msra.mxu1 %v1214_v5  ;;  %1061 = vmatprep.mubr.msk.f32.mxu1 %vm1174_vm0, %v1175_v4  ;;  %v571_v4 = vld [vmem:[#allocation2 + $0xc] sm:$0x3] }
 0x472   :  { %1109 = vmatprep.subr.bf16.mxu1 %v1173_v0 }
 0x475   :  { %1111 = vmatpush3.bf16.msra.mxu1 %v1224_v9 }
 0x543   :  { %v553_v2 = vpop.f32.mrb[8].mxu1 }
 0x544   :  { %v557_v3 = vadd.f32 %v553_v2, %v483_v1  ;;  %v1041_v6 = vpop.f32.mrb[9].mxu1  ;;  %v759_v1 = vld [vmem:[%s1423_s2 + $0x70] sm:$0xff]  ;;  %v760_v2 = vld [vmem:[%s1423_s2 + $0x78] sm:$0xff] }
 0x546   :  { %1167 = vtanh.f32 %v557_v3  ;;  %v1142_v3 = vpack.c.bf16 %v760_v2, %v759_v1 }
 0x550   :  { %v1168_v7 = vpop.eup %1167 }
 0x551   :  { %1051 = vmatmul.mubr.msk.f32.vlgmr.msra.gmra.mrb[2].mxu0 %vm61_vm1, %v1168_v7  ;;  %v566_v8 = vrot.slane %v1168_v7, %v1264_v41 }
 0x552   :  { %1115 = vmatpush3.bf16.msra.mxu0 %v1114_v20 }
 0x553   :  { %567 = vrot.lane.b32.xlu0 %v566_v8, %s1179_s0  ;;  %1117 = vmatprep.subr.bf16.mxu0 %v1116_v21 }
 0x556   :  { %1119 = vmatpush3.bf16.msra.mxu0 %v1118_v26 }
 0x557   :  { %1121 = vmatprep.subr.bf16.mxu0 %v1120_v27 }
 0x55a   :  { %1123 = vmatpush3.bf16.msra.mxu0 %v1122_v32 }
 0x55b   :  { %1125 = vmatprep.subr.bf16.mxu0 %v1124_v33 }
 0x55e   :  { %1127 = vmatpush3.bf16.msra.mxu0 %v1126_v38 }
 0x55f   :  { %1129 = vmatprep.subr.bf16.mxu0 %v1128_v39 }
 0x562   :  { %1131 = vmatpush3.bf16.msra.mxu0 %v1130_v46 }
 0x563   :  { %1133 = vmatprep.subr.bf16.mxu0 %v1132_v47 }
 0x566   :  { %1135 = vmatpush3.bf16.msra.mxu0 %v1134_v54 }
 0x567   :  { %1137 = vmatprep.subr.bf16.mxu0 %v1136_v58 }
 0x56a   :  { %1139 = vmatpush3.bf16.msra.mxu0 %v1138_v62 }
 0x56b   :  { %1141 = vmatprep.subr.bf16.mxu0 %v1140_v63 }
 0x56e   :  { %1143 = vmatpush3.bf16.msra.mxu0 %v1142_v3 }
 0x5c5   :  { %v568_v5 = vpop.permute.xlu0 %567 }
 0x5c6   :  { %570 = vst.msk [vmem:[#allocation3 + $0x2] sm:$0x3] %vm229_vm3, %v568_v5 }
 0x624   :  { %v640_v10 = vpop.f32.mrb[2].mxu0 }
 0x625   :  { %v644_v0 = vadd.f32 %v640_v10, %v571_v4  ;;  %v1052_v11 = vpop.f32.mrb[3].mxu0 }
 0x627   :  { %1169 = vtanh.f32 %v644_v0  ;;  %v897_v0 = vld [vmem:[%s1423_s2 + $0x100] ss:$0 sm:$0xff] }
 0x631   :  { %v1170_v9 = vpop.eup %1169 }
 0x632   :  { %1062 = vmatmul.mubr.msk.f32.vlgmr.msra.gmra.mrb[10].mxu1 %vm61_vm1, %v1170_v9  ;;  %v653_v12 = vrot.slane %v1170_v9, %v1264_v41 }
 0x634   :  { %654 = vrot.lane.b32.xlu0 %v653_v12, %s1180_s1 }
 0x6a6   :  { %v655_v45 = vpop.permute.xlu0 %654 }
 0x6a7   :  { %657 = vst.msk [vmem:[#allocation3 + $0x2] sm:$0x3] %vm317_vm4, %v655_v45 }
 0x705   :  { %v727_v49 = vpop.f32.mrb[10].mxu1 }
 0x706   :  { %v731_v52 = vadd.f32 %v727_v49, %v658_v48  ;;  %v1063_v53 = vpop.f32.mrb[11].mxu1 }
 0x708   :  { %1171 = vtanh.f32 %v731_v52 }
 0x712   :  { %v1172_v6 = vpop.eup %1171 }
 0x713   :  { %v740_v7 = vrot.slane %v1172_v6, %v1264_v41  ;;  %v899_v41 = vld [vmem:[%s1423_s2 + $0x101] ss:$0 sm:$0xff] }
 0x715   :  { %741 = vrot.lane.b32.xlu0 %v740_v7, %s1181_s30 }
 0x787   :  { %v742_v8 = vpop.permute.xlu0 %741 }
 0x788   :  { %744 = vst.msk [vmem:[#allocation3 + $0x2] sm:$0x3] %vm405_vm5, %v742_v8 }
 0x78f   :  { %v898_v5 = vld.sshfl [vmem:[#allocation3] sm:$0x33 pattern:$0x76325410] }
 0x790   :  { %v793_v4 = vcombine.high %v898_v5, %v898_v5 }
 0x792   :  { %860 = vmatprep.mubr.f32.mxu0 %v793_v4 }
 0x793   :  { %861 = vmatmul.mubr.f32.vlgmr.msra.gmra.mrb[4].mxu0 %v898_v5 }
 0x866   :  { %v973_v10 = vpop.f32.mrb[4].mxu0 }
 0x867   :  { %v974_v11 = vpop.f32.mrb[5].mxu0 }
 0x868   :  { %v975_v9 = vadd.f32 %v974_v11, %v973_v10 }
 0x86a   :  { %v863_v12 = vadd.f32 %v975_v9, %v897_v0 }
 0x86c   :  { %v866_v13 = vmax.f32 %v863_v12, 0.0 }
 0x86e   :  { %v871_v14 = vmul.f32 %v899_v41, %v866_v13 }
 0x870   :  { %v873_v15 = vsel %vm872_vm6, %v871_v14, 0.0 }
 0x871   :  { %874 = vadd.xlane.f32.xlu1 %v873_v15 }
 0x8fe   :  { %v875_v17 = vpop.xlane.xlu1 %874 }
 0x8ff   :  { %v880_v18 = vadd.f32 %v900_v16, %v875_v17 }
 0x901   :  { %882 = vst.msk [vmem:[%s1424_s3] sm:$0x3] %vm881_vm7, %v880_v18 }

</bundles_post_ra>
